<compile_context>
chip_gen: v5e
topology: v5e:2x2
jax: 0.10.0
libtpu: 0.0.40
codegen_flags: <defaults>
</compile_context>

<pallas_src>
import functools

import jax
import jax.numpy as jnp
import numpy as np
from jax.experimental import pallas as pl
from jax.experimental.pallas import tpu as pltpu


def _round_up(x, m):
    return (x + m - 1) // m * m


# ---------------------------------------------------------------------------
# Kernel
# ---------------------------------------------------------------------------
def _maxpool_gate_kernel(dv_ref, vprev_ref, spk_ref, vnew_ref, *, momentum):
    """Blocks: dv_ref (4, TB, TL) act dtype; vprev/vnew (4, TB, TL) f32;
    spk_ref (TB, TL) act dtype.  Leading axis = 2x2 window phase, (kh, kw)
    row-major (matches torch argmax / unpool index order)."""
    dv = dv_ref[...]                       # native activation dtype
    vprev = vprev_ref[...]                 # fp32 persistent statistic
    dv_f = dv.astype(jnp.float32)

    # statistic update (elementwise, fp32)
    if momentum is None:
        v = vprev + dv_f
    else:
        v = momentum * vprev + (1.0 - momentum) * dv_f
    vnew_ref[...] = v

    v0, v1, v2, v3 = v[0], v[1], v[2], v[3]
    d0, d1, d2, d3 = dv[0], dv[1], dv[2], dv[3]

    # max over the 2x2 window of the statistic v
    vmax = jnp.maximum(jnp.maximum(v0, v1), jnp.maximum(v2, v3))

    # argmax with PyTorch tie-breaking: first occurrence in (kh, kw) order
    sel0 = v0 == vmax
    sel1 = (v1 == vmax) & ~sel0
    taken01 = sel0 | sel1
    sel2 = (v2 == vmax) & ~taken01
    sel3 = ~(taken01 | sel2)               # at least one phase equals vmax

    z = jnp.zeros((), dv.dtype)
    s0 = jnp.where(sel0, d0, z)
    s1 = jnp.where(sel1, d1, z)
    s2 = jnp.where(sel2, d2, z)
    s3 = jnp.where(sel3, d3, z)
    spk_raw = jnp.maximum(jnp.maximum(s0, s1), jnp.maximum(s2, s3))

    # max_unpool2d gives a nonzero entry only where v_max itself is nonzero;
    # apply the gate once at the end instead of per phase.
    spk = jnp.where(vmax != 0.0, spk_raw, z)
    spk_ref[...] = spk.astype(spk_ref.dtype)


# ---------------------------------------------------------------------------
# Tiling / wrapper
# ---------------------------------------------------------------------------
_VMEM_BUDGET = 12 * 1024 * 1024  # conservative: fits v5e's 16 MiB default scoped VMEM


def _choose_tiles(Bp, Lp, act_itemsize):
    # lane tile: largest of (512, 256, 128) that exactly divides the padded L
    TL = next(t for t in (512, 256, 128) if t <= Lp and Lp % t == 0)
    # per-element bytes, double-buffered: dv(4)+spk(1) act dtype, v+vnew 4x f32 each
    per_elem = 2 * (5 * act_itemsize + 32)
    cap = max(8, (_VMEM_BUDGET // (per_elem * TL)) // 8 * 8)
    TB = min(cap, Bp)
    return TB, TL


@functools.partial(jax.jit, static_argnums=(2,), donate_argnums=(1,))
def _forward_step(dv, v_ph, momentum):
    """dv: (N,C,H,W) activations; v_ph: (4, Bp, Lp) fp32 phase-layout statistic.
    Returns (spk (N,C,Ho,Wo), new v_ph)."""
    N, C, H, W = dv.shape
    Ho, Wo = H // 2, W // 2
    B, L = N * C, Ho * Wo
    _, Bp, Lp = v_ph.shape

    # window-phase decomposition of dv -> (4, B, Ho*Wo), phase = kh*2 + kw
    x = dv.reshape(B, Ho, 2, Wo, 2)
    dv_ph = x.transpose(2, 4, 0, 1, 3).reshape(4, B, L)
    if (Bp, Lp) != (B, L):
        dv_ph = jnp.zeros((4, Bp, Lp), dv.dtype).at[:, :B, :L].set(dv_ph)

    TB, TL = _choose_tiles(Bp, Lp, dv.dtype.itemsize)
    grid = (pl.cdiv(Bp, TB), pl.cdiv(Lp, TL))

    kernel = functools.partial(_maxpool_gate_kernel, momentum=momentum)
    spk_flat, v_new = pl.pallas_call(
        kernel,
        out_shape=(
            jax.ShapeDtypeStruct((Bp, Lp), dv.dtype),        # pooled spikes
            jax.ShapeDtypeStruct((4, Bp, Lp), jnp.float32),  # updated statistic
        ),
        grid=grid,
        in_specs=[
            pl.BlockSpec((4, TB, TL), lambda i, j: (0, i, j)),
            pl.BlockSpec((4, TB, TL), lambda i, j: (0, i, j)),
        ],
        out_specs=(
            pl.BlockSpec((TB, TL), lambda i, j: (i, j)),
            pl.BlockSpec((4, TB, TL), lambda i, j: (0, i, j)),
        ),
        input_output_aliases={1: 1},     # update the statistic in place
        compiler_params=pltpu.CompilerParams(
            dimension_semantics=("parallel", "parallel")),
    )(dv_ph, v_ph)

    spk = spk_flat[:B, :L].reshape(N, C, Ho, Wo)
    return spk, v_new


class MaxPool2dPallas:
    """Stateful wrapper mirroring the PyTorch module interface (NCHW I/O).

    The spike statistic is stored internally in fp32 window-phase layout
    (4, round_up(N*C, 8), round_up(Ho*Wo, 128)) so it never needs the strided
    split/scatter glue and never round-trips through a low-precision dtype.
    """

    def __init__(self, kernel_size=2, stride=None, padding=0, dilation=1,
                 return_indices=False, ceil_mode=False, momentum=None):
        # TODO(synk): only kernel_size=stride=2, padding=0, dilation=1,
        # ceil_mode=False (the standard ANN2SNN config) is implemented; other
        # configs need a generalized window decomposition.
        self.kernel_size = kernel_size
        self.stride = stride or kernel_size
        self.padding = padding
        self.dilation = dilation
        self.return_indices = return_indices
        self.ceil_mode = ceil_mode
        assert momentum is None or momentum <= 1
        self.momentum = momentum
        self.v_ph = None
        self._shape = None

    def __call__(self, dv):
        assert self.kernel_size == 2 and self.stride == 2
        assert self.padding == 0 and self.dilation == 1 and not self.ceil_mode
        N, C, H, W = dv.shape
        assert H % 2 == 0 and W % 2 == 0
        if self.v_ph is None:
            B, L = N * C, (H // 2) * (W // 2)
            Bp, Lp = _round_up(B, 8), _round_up(L, 128)
            self.v_ph = jnp.zeros((4, Bp, Lp), jnp.float32)
            self._shape = (N, C, H, W)
        assert self._shape == (N, C, H, W)
        spk, self.v_ph = _forward_step(dv, self.v_ph, self.momentum)
        return spk

    @property
    def v(self):
        """Reconstruct the statistic in NCHW fp32 (for inspection/testing)."""
        if self.v_ph is None:
            return None
        N, C, H, W = self._shape
        Ho, Wo = H // 2, W // 2
        B, L = N * C, Ho * Wo
        vp = self.v_ph[:, :B, :L].reshape(2, 2, B, Ho, Wo)
        return vp.transpose(2, 3, 0, 4, 1).reshape(N, C, H, W)

    def reset(self):
        self.v_ph = None
        self._shape = None


# ---------------------------------------------------------------------------
# Pure numpy reference (PyTorch semantics, k=s=2, pad=0, dil=1)
# ---------------------------------------------------------------------------
def _ref_forward_np(dv, v_prev, momentum=None):
    dv = np.asarray(dv, np.float32)
    v_prev = np.asarray(v_prev, np.float32)
    v = v_prev + dv if momentum is None else momentum * v_prev + (1 - momentum) * dv
    N, C, H, W = dv.shape
    Ho, Wo = H // 2, W // 2
    spk = np.zeros((N, C, Ho, Wo), np.float32)
    for n in range(N):
        for c in range(C):
            for i in range(Ho):
                for j in range(Wo):
                    wv = v[n, c, 2 * i:2 * i + 2, 2 * j:2 * j + 2]
                    wd = dv[n, c, 2 * i:2 * i + 2, 2 * j:2 * j + 2]
                    idx = int(np.argmax(wv))            # first max (torch tie-break)
                    gated = np.zeros(4, np.float32)
                    if wv.flat[idx] != 0.0:
                        gated[idx] = wd.flat[idx]
                    spk[n, c, i, j] = gated.max()
    return spk, v


if __name__ == "__main__":
    key = jax.random.PRNGKey(0)
    N, C, H, W = 2, 4, 16, 16

    # accumulated-spike statistic (momentum=None), several timesteps
    pool = MaxPool2dPallas(kernel_size=2)
    v_ref = np.zeros((N, C, H, W), np.float32)
    ok = True
    for t in range(3):
        key, sub = jax.random.split(key)
        dv = jax.random.bernoulli(sub, 0.3, (N, C, H, W)).astype(jnp.float32)
        spk = jax.block_until_ready(pool(dv))

        spk_ref, v_ref = _ref_forward_np(np.asarray(dv), v_ref, momentum=None)
        ok &= np.allclose(np.asarray(spk), spk_ref, atol=1e-6)
        ok &= np.allclose(np.asarray(pool.v), v_ref, atol=1e-6)

    # momentum path
    pool_m = MaxPool2dPallas(kernel_size=2, momentum=0.5)
    key, sub = jax.random.split(key)
    dv = jax.random.bernoulli(sub, 0.3, (N, C, H, W)).astype(jnp.float32)
    spk_m = jax.block_until_ready(pool_m(dv))
    spk_m_ref, v_m_ref = _ref_forward_np(
        np.asarray(dv), np.zeros((N, C, H, W), np.float32), momentum=0.5)
    ok &= np.allclose(np.asarray(spk_m), spk_m_ref, atol=1e-6)
    ok &= np.allclose(np.asarray(pool_m.v), v_m_ref, atol=1e-6)

    assert ok, "mismatch vs reference"
    print("KERNEL_OK")
</pallas_src>

<mosaic_0001>
module attributes {stable_mosaic.version = 11 : i64} {
  func.func @_maxpool_gate_kernel(%arg0: i32, %arg1: i32, %arg2: memref<4x8x128xf32, #tpu.memory_space<vmem>>, %arg3: memref<4x8x128xf32, #tpu.memory_space<vmem>>, %arg4: memref<8x128xf32, #tpu.memory_space<vmem>>, %arg5: memref<4x8x128xf32, #tpu.memory_space<vmem>>) attributes {dimension_semantics = [#tpu.dimension_semantics<parallel>, #tpu.dimension_semantics<parallel>], iteration_bounds = array<i64: 1, 1>, scalar_prefetch = 0 : i64, scratch_operands = 0 : i64, tpu.core_type = #tpu.core_type<tc>, window_params = [{transform_indices = @transform_0, window_bounds = array<i64: 4, 8, 128>}, {transform_indices = @transform_1, window_bounds = array<i64: 4, 8, 128>}, {transform_indices = @transform_2, window_bounds = array<i64: 8, 128>}, {transform_indices = @transform_3, window_bounds = array<i64: 4, 8, 128>}]} {
    %c0 = arith.constant 0 : index
    %c0_0 = arith.constant 0 : index
    %c0_1 = arith.constant 0 : index
    %0 = vector.load %arg2[%c0, %c0_0, %c0_1] : memref<4x8x128xf32, #tpu.memory_space<vmem>>, vector<4x8x128xf32>
    %c0_2 = arith.constant 0 : index
    %c0_3 = arith.constant 0 : index
    %c0_4 = arith.constant 0 : index
    %1 = vector.load %arg3[%c0_2, %c0_3, %c0_4] : memref<4x8x128xf32, #tpu.memory_space<vmem>>, vector<4x8x128xf32>
    %2 = arith.addf %1, %0 : vector<4x8x128xf32>
    %c0_5 = arith.constant 0 : index
    %c0_6 = arith.constant 0 : index
    %c0_7 = arith.constant 0 : index
    %3 = vector.load %arg5[%c0_5, %c0_6, %c0_7] : memref<4x8x128xf32, #tpu.memory_space<vmem>>, vector<4x8x128xf32>
    tpu.vector_store %arg5[%c0_5, %c0_6, %c0_7], %2 {strides = array<i32>} : memref<4x8x128xf32, #tpu.memory_space<vmem>>, vector<4x8x128xf32>,
    %4 = vector.extract_strided_slice %2 {offsets = [0, 0, 0], sizes = [1, 8, 128], strides = [1, 1, 1]} : vector<4x8x128xf32> to vector<1x8x128xf32>
    %5 = vector.shape_cast %4 : vector<1x8x128xf32> to vector<8x128xf32>
    %6 = vector.extract_strided_slice %2 {offsets = [1, 0, 0], sizes = [1, 8, 128], strides = [1, 1, 1]} : vector<4x8x128xf32> to vector<1x8x128xf32>
    %7 = vector.shape_cast %6 : vector<1x8x128xf32> to vector<8x128xf32>
    %8 = vector.extract_strided_slice %2 {offsets = [2, 0, 0], sizes = [1, 8, 128], strides = [1, 1, 1]} : vector<4x8x128xf32> to vector<1x8x128xf32>
    %9 = vector.shape_cast %8 : vector<1x8x128xf32> to vector<8x128xf32>
    %10 = vector.extract_strided_slice %2 {offsets = [3, 0, 0], sizes = [1, 8, 128], strides = [1, 1, 1]} : vector<4x8x128xf32> to vector<1x8x128xf32>
    %11 = vector.shape_cast %10 : vector<1x8x128xf32> to vector<8x128xf32>
    %12 = vector.extract_strided_slice %0 {offsets = [0, 0, 0], sizes = [1, 8, 128], strides = [1, 1, 1]} : vector<4x8x128xf32> to vector<1x8x128xf32>
    %13 = vector.shape_cast %12 : vector<1x8x128xf32> to vector<8x128xf32>
    %14 = vector.extract_strided_slice %0 {offsets = [1, 0, 0], sizes = [1, 8, 128], strides = [1, 1, 1]} : vector<4x8x128xf32> to vector<1x8x128xf32>
    %15 = vector.shape_cast %14 : vector<1x8x128xf32> to vector<8x128xf32>
    %16 = vector.extract_strided_slice %0 {offsets = [2, 0, 0], sizes = [1, 8, 128], strides = [1, 1, 1]} : vector<4x8x128xf32> to vector<1x8x128xf32>
    %17 = vector.shape_cast %16 : vector<1x8x128xf32> to vector<8x128xf32>
    %18 = vector.extract_strided_slice %0 {offsets = [3, 0, 0], sizes = [1, 8, 128], strides = [1, 1, 1]} : vector<4x8x128xf32> to vector<1x8x128xf32>
    %19 = vector.shape_cast %18 : vector<1x8x128xf32> to vector<8x128xf32>
    %20 = arith.maximumf %5, %7 : vector<8x128xf32>
    %21 = arith.maximumf %9, %11 : vector<8x128xf32>
    %22 = arith.maximumf %20, %21 : vector<8x128xf32>
    %23 = arith.cmpf oeq, %5, %22 : vector<8x128xf32>
    %24 = arith.cmpf oeq, %7, %22 : vector<8x128xf32>
    %cst = arith.constant dense<true> : vector<8x128xi1>
    %25 = arith.xori %23, %cst : vector<8x128xi1>
    %26 = arith.andi %24, %25 : vector<8x128xi1>
    %27 = arith.ori %23, %26 : vector<8x128xi1>
    %28 = arith.cmpf oeq, %9, %22 : vector<8x128xf32>
    %cst_8 = arith.constant dense<true> : vector<8x128xi1>
    %29 = arith.xori %27, %cst_8 : vector<8x128xi1>
    %30 = arith.andi %28, %29 : vector<8x128xi1>
    %31 = arith.ori %27, %30 : vector<8x128xi1>
    %cst_9 = arith.constant dense<true> : vector<8x128xi1>
    %32 = arith.xori %31, %cst_9 : vector<8x128xi1>
    %cst_10 = arith.constant 0.000000e+00 : f32
    %33 = vector.broadcast %cst_10 : f32 to vector<8x128xf32>
    %34 = arith.select %23, %13, %33 : vector<8x128xi1>, vector<8x128xf32>
    %cst_11 = arith.constant 0.000000e+00 : f32
    %35 = vector.broadcast %cst_11 : f32 to vector<8x128xf32>
    %36 = arith.select %26, %15, %35 : vector<8x128xi1>, vector<8x128xf32>
    %cst_12 = arith.constant 0.000000e+00 : f32
    %37 = vector.broadcast %cst_12 : f32 to vector<8x128xf32>
    %38 = arith.select %30, %17, %37 : vector<8x128xi1>, vector<8x128xf32>
    %cst_13 = arith.constant 0.000000e+00 : f32
    %39 = vector.broadcast %cst_13 : f32 to vector<8x128xf32>
    %40 = arith.select %32, %19, %39 : vector<8x128xi1>, vector<8x128xf32>
    %41 = arith.maximumf %34, %36 : vector<8x128xf32>
    %42 = arith.maximumf %38, %40 : vector<8x128xf32>
    %43 = arith.maximumf %41, %42 : vector<8x128xf32>
    %cst_14 = arith.constant 0.000000e+00 : f32
    %44 = vector.broadcast %cst_14 : f32 to vector<8x128xf32>
    %45 = arith.cmpf one, %22, %44 : vector<8x128xf32>
    %cst_15 = arith.constant 0.000000e+00 : f32
    %46 = vector.broadcast %cst_15 : f32 to vector<8x128xf32>
    %47 = arith.select %45, %43, %46 : vector<8x128xi1>, vector<8x128xf32>
    %c0_16 = arith.constant 0 : index
    %c0_17 = arith.constant 0 : index
    %48 = vector.load %arg4[%c0_16, %c0_17] : memref<8x128xf32, #tpu.memory_space<vmem>>, vector<8x128xf32>
    tpu.vector_store %arg4[%c0_16, %c0_17], %47 {strides = array<i32>} : memref<8x128xf32, #tpu.memory_space<vmem>>, vector<8x128xf32>,
    return
  }
  func.func @transform_0(%arg0: i32, %arg1: i32) -> (i32, i32, i32) {
    %c0_i32 = arith.constant 0 : i32
    %c0_i32_0 = arith.constant 0 : i32
    return %c0_i32, %arg0, %arg1 : i32, i32, i32
  }
  func.func @transform_1(%arg0: i32, %arg1: i32) -> (i32, i32, i32) {
    %c0_i32 = arith.constant 0 : i32
    %c0_i32_0 = arith.constant 0 : i32
    return %c0_i32, %arg0, %arg1 : i32, i32, i32
  }
  func.func @transform_2(%arg0: i32, %arg1: i32) -> (i32, i32) {
    %c0_i32 = arith.constant 0 : i32
    return %arg0, %arg1 : i32, i32
  }
  func.func @transform_3(%arg0: i32, %arg1: i32) -> (i32, i32, i32) {
    %c0_i32 = arith.constant 0 : i32
    %c0_i32_0 = arith.constant 0 : i32
    return %c0_i32, %arg0, %arg1 : i32, i32, i32
  }
}

</mosaic_0001>

<bundles_post_ra>
// kernel: _forward_step.1
= control target key start
LH: loop header
LB: loop body
LE: loop exit
PB: predicated region body
PF: predicated region fallthrough
CT: control target
= control target key end

     0   :  { %vm61_vm2 = vmmov 1   ;;  %s121_s0 = inlined_call_operand.vmem [shape: f32[4,8,128], index: 0, kind: input, shape index: {}]   ;;  %s122_s1 = inlined_call_operand.vmem [shape: f32[4,8,128], index: 1, kind: input, shape index: {}, may-alias: {1,3}]   ;;  %s123_s3 = inlined_call_operand.vmem [shape: f32[4,8,128], index: 3, kind: output, shape index: {1}, may-alias: {1,3}]   ;;  %s124_s2 = inlined_call_operand.vmem [shape: f32[8,128], index: 2, kind: output, shape index: {0}]  }
   0x1   :  { %v13_v0 = vld [vmem:[%s121_s0] sm:$0xff]  ;;  %v14_v2 = vld [vmem:[%s121_s0 + $0x8] sm:$0xff]  ;;  %v15_v5 = vld [vmem:[%s121_s0 + $0x10] sm:$0xff] }
   0x2   :  { %v17_v1 = vld [vmem:[%s122_s1] sm:$0xff]  ;;  %v18_v4 = vld [vmem:[%s122_s1 + $0x8] sm:$0xff]  ;;  %v19_v6 = vld [vmem:[%s122_s1 + $0x10] sm:$0xff] }
   0x3   :  { %v21_v3 = vadd.f32 %v17_v1, %v13_v0  ;;  %v22_v7 = vadd.f32 %v18_v4, %v14_v2  ;;  %v23_v8 = vadd.f32 %v19_v6, %v15_v5  ;;  %v16_v9 = vld [vmem:[%s121_s0 + $0x18] sm:$0xff] }
   0x4   :  { %v20_v10 = vld [vmem:[%s122_s1 + $0x18] sm:$0xff] }
   0x5   :  { %25 = vst [vmem:[%s123_s3] sm:$0xff] %v21_v3  ;;  %v24_v11 = vadd.f32 %v20_v10, %v16_v9  ;;  %v29_v12 = vmax.f32 %v21_v3, %v22_v7 }
   0x6   :  { %26 = vst [vmem:[%s123_s3 + $0x8] sm:$0xff] %v22_v7 }
   0x7   :  { %27 = vst [vmem:[%s123_s3 + $0x10] sm:$0xff] %v23_v8  ;;  %v30_v13 = vmax.f32 %v23_v8, %v24_v11 }
   0x8   :  { %28 = vst [vmem:[%s123_s3 + $0x18] sm:$0xff] %v24_v11 }
   0x9   :  { %v31_v14 = vmax.f32 %v29_v12, %v30_v13 }
   0xb   :  { %vm32_vm0 = vcmp.eq.f32.partialorder %v21_v3, %v31_v14  ;;  %vm33_vm1 = vcmp.eq.f32.partialorder %v22_v7, %v31_v14  ;;  %vm37_vm5 = vcmp.eq.f32.partialorder %v23_v8, %v31_v14  ;;  %vm49_vm11 = vcmp.ne.f32.partialorder %v31_v14, 0.0 }
   0xc   :  { %vm34_vm3 = vmxor %vm32_vm0, %vm61_vm2  ;;  %v42_v15 = vsel %vm32_vm0, %v13_v0, 0.0 }
   0xd   :  { %vm35_vm4 = vmand %vm33_vm1, %vm34_vm3 }
   0xe   :  { %vm36_vm6 = vmor %vm32_vm0, %vm35_vm4  ;;  %v43_v16 = vsel %vm35_vm4, %v14_v2, 0.0 }
   0xf   :  { %vm38_vm7 = vmxor %vm36_vm6, %vm61_vm2  ;;  %v46_v18 = vmax.f32 %v42_v15, %v43_v16 }
  0x10   :  { %vm39_vm8 = vmand %vm37_vm5, %vm38_vm7 }
  0x11   :  { %vm40_vm9 = vmor %vm36_vm6, %vm39_vm8  ;;  %v44_v17 = vsel %vm39_vm8, %v15_v5, 0.0 }
  0x12   :  { %vm41_vm10 = vmxor %vm40_vm9, %vm61_vm2 }
  0x13   :  { %v45_v19 = vsel %vm41_vm10, %v16_v9, 0.0 }
  0x14   :  { %v47_v20 = vmax.f32 %v44_v17, %v45_v19 }
  0x16   :  { %v48_v21 = vmax.f32 %v46_v18, %v47_v20 }
  0x18   :  { %v50_v22 = vsel %vm49_vm11, %v48_v21, 0.0 }
  0x19   :  { %51 = vst [vmem:[%s124_s2] sm:$0xff] %v50_v22 }

</bundles_post_ra>
